<compile_context>
chip_gen: v7x
topology: tpu7x:2x2x1
jax: 0.10.0
libtpu: 0.0.40
codegen_flags: <defaults>
</compile_context>

<pallas_src>
import jax
import jax.numpy as jnp
from jax import lax
from jax.experimental import pallas as pl
from jax.experimental.pallas import tpu as pltpu

LAYER_NORM_EPS = 1e-5  # transformers RobertaConfig default layer_norm_eps

# Default row-tile size.  512 rows x H=1024 f32 is 2 MiB per tile; with
# double-buffered input + output tiles plus a resident (H, H) weight this
# stays comfortably inside the 32 MiB default scoped VMEM on all of
# v5e / v6e / v7x (v7x has only 64 MiB physical VMEM, so stay conservative).
_DEFAULT_TM = 512


def _self_output_kernel(x_ref, w_ref, b_ref, gamma_ref, beta_ref, o_ref):
    # x_ref:     (TM, H)  row tile of flattened tokens (native dtype)
    # w_ref:     (H, H)   dense weight in PyTorch (out, in) layout, VMEM-resident
    # b_ref:     (1, H)   dense bias
    # gamma_ref: (1, H)   LayerNorm weight
    # beta_ref:  (1, H)   LayerNorm bias
    x = x_ref[...]
    w = w_ref[...]

    # Dense: y = x @ W^T (contract the 'in' dim of both operands) with f32
    # accumulation on the MXU.  No pre-cast to f32: bf16/f32 inputs both hit
    # the native MXU rate and halve VMEM/HBM traffic vs an f32 upcast.
    y = lax.dot_general(
        x, w,
        dimension_numbers=(((1,), (1,)), ((), ())),
        preferred_element_type=jnp.float32)
    y = y + b_ref[...].astype(jnp.float32)

    # Dropout: identity in eval / inference mode.

    # LayerNorm over the hidden (lane) axis, statistics in f32.
    mean = jnp.mean(y, axis=-1, keepdims=True)
    centered = y - mean
    var = jnp.mean(centered * centered, axis=-1, keepdims=True)
    inv = lax.rsqrt(var + LAYER_NORM_EPS)          # EUP — effectively free here
    gamma = gamma_ref[...].astype(jnp.float32)
    beta = beta_ref[...].astype(jnp.float32)
    out = centered * inv * gamma + beta

    o_ref[...] = out.astype(o_ref.dtype)


def roberta_self_output(hidden_states, input_tensor, dense_w, dense_b,
                        ln_gamma, ln_beta, *, tm=_DEFAULT_TM):
    """hidden_states / input_tensor: (B, S, H).  Returns (B, S, H).

    `input_tensor` is accepted for signature parity with the PyTorch module
    but (as in the reference forward) is not used.
    """
    del input_tensor  # unused by the reference forward pass
    B, S, H = hidden_states.shape
    N = B * S

    x2d = hidden_states.reshape(N, H)
    b2d = dense_b.reshape(1, H)
    g2d = ln_gamma.reshape(1, H)
    be2d = ln_beta.reshape(1, H)

    # Row-tile size: full extent for small N, otherwise a sublane-aligned tile.
    TM = N if N <= tm else tm
    grid = (pl.cdiv(N, TM),)

    out2d = pl.pallas_call(
        _self_output_kernel,
        out_shape=jax.ShapeDtypeStruct((N, H), hidden_states.dtype),
        grid_spec=pltpu.PrefetchScalarGridSpec(
            num_scalar_prefetch=0,
            grid=grid,
            in_specs=[
                # Row tile of activations marches along the grid axis.
                pl.BlockSpec((TM, H), lambda i: (i, 0)),
                # Weight / bias / LN params: constant block index -> resident.
                pl.BlockSpec((H, H), lambda i: (0, 0)),
                pl.BlockSpec((1, H), lambda i: (0, 0)),
                pl.BlockSpec((1, H), lambda i: (0, 0)),
                pl.BlockSpec((1, H), lambda i: (0, 0)),
            ],
            out_specs=pl.BlockSpec((TM, H), lambda i: (i, 0)),
        ),
        compiler_params=pltpu.CompilerParams(
            # Row tiles are fully independent -> "parallel" lets v7x shard
            # across its 2 TensorCores; neutral on v5e/v6e.
            dimension_semantics=("parallel",)),
    )(x2d, dense_w, b2d, g2d, be2d)

    return out2d.reshape(B, S, H)


if __name__ == "__main__":
    # Small shapes consistent with the module's forward: (batch, seq, hidden).
    B, S, H = 2, 8, 32

    key = jax.random.PRNGKey(0)
    k_hs, k_it, k_w, k_b, k_g, k_be = jax.random.split(key, 6)

    hidden_states = jax.random.normal(k_hs, (B, S, H), dtype=jnp.float32)
    input_tensor = jax.random.normal(k_it, (B, S, H), dtype=jnp.float32)

    # Deterministic synthetic parameters; shapes follow nn.Linear(H, H) (out, in)
    # and nn.LayerNorm(H).
    dense_w = jax.random.normal(k_w, (H, H), dtype=jnp.float32) * 0.02
    dense_b = jax.random.normal(k_b, (H,), dtype=jnp.float32) * 0.02
    ln_gamma = jnp.ones((H,), dtype=jnp.float32) + 0.01 * jax.random.normal(k_g, (H,))
    ln_beta = 0.01 * jax.random.normal(k_be, (H,), dtype=jnp.float32)

    out = roberta_self_output(hidden_states, input_tensor, dense_w, dense_b,
                              ln_gamma, ln_beta)
    jax.block_until_ready(out)

    # Pure-JAX reference for sanity.
    y_ref = hidden_states @ dense_w.T + dense_b
    mean = y_ref.mean(axis=-1, keepdims=True)
    var = ((y_ref - mean) ** 2).mean(axis=-1, keepdims=True)
    ref = (y_ref - mean) / jnp.sqrt(var + LAYER_NORM_EPS) * ln_gamma + ln_beta
    assert jnp.allclose(out, ref, atol=1e-4, rtol=1e-4), "mismatch vs reference"

    print("KERNEL_OK")
</pallas_src>

<mosaic_0001>
module attributes {stable_mosaic.version = 11 : i64} {
  func.func @_self_output_kernel(%arg0: i32, %arg1: memref<16x32xf32, #tpu.memory_space<vmem>>, %arg2: memref<32x32xf32, #tpu.memory_space<vmem>>, %arg3: memref<1x32xf32, #tpu.memory_space<vmem>>, %arg4: memref<1x32xf32, #tpu.memory_space<vmem>>, %arg5: memref<1x32xf32, #tpu.memory_space<vmem>>, %arg6: memref<16x32xf32, #tpu.memory_space<vmem>>) attributes {dimension_semantics = [#tpu.dimension_semantics<parallel>], iteration_bounds = array<i64: 1>, scalar_prefetch = 0 : i64, scratch_operands = 0 : i64, tpu.core_type = #tpu.core_type<tc>, window_params = [{transform_indices = @transform_0, window_bounds = array<i64: 16, 32>}, {pipeline_mode = #tpu.pipeline_mode<synchronous>, transform_indices = @transform_1, window_bounds = array<i64: 32, 32>}, {pipeline_mode = #tpu.pipeline_mode<synchronous>, transform_indices = @transform_2, window_bounds = array<i64: 1, 32>}, {pipeline_mode = #tpu.pipeline_mode<synchronous>, transform_indices = @transform_3, window_bounds = array<i64: 1, 32>}, {pipeline_mode = #tpu.pipeline_mode<synchronous>, transform_indices = @transform_4, window_bounds = array<i64: 1, 32>}, {transform_indices = @transform_5, window_bounds = array<i64: 16, 32>}]} {
    %c0 = arith.constant 0 : index
    %c0_0 = arith.constant 0 : index
    %0 = vector.load %arg1[%c0, %c0_0] : memref<16x32xf32, #tpu.memory_space<vmem>>, vector<16x32xf32>
    %c0_1 = arith.constant 0 : index
    %c0_2 = arith.constant 0 : index
    %1 = vector.load %arg2[%c0_1, %c0_2] : memref<32x32xf32, #tpu.memory_space<vmem>>, vector<32x32xf32>
    %cst = arith.constant dense<0.000000e+00> : vector<16x32xf32>
    %2 = tpu.matmul %0, %1, %cst {dimension_numbers = #tpu.dot_dimension_numbers<[1], [1], [0], [0], [0, 0, 1, 0], [], []>} : vector<16x32xf32>, vector<32x32xf32>, vector<16x32xf32> -> vector<16x32xf32>
    %c0_3 = arith.constant 0 : index
    %c0_4 = arith.constant 0 : index
    %3 = vector.load %arg3[%c0_3, %c0_4] : memref<1x32xf32, #tpu.memory_space<vmem>>, vector<1x32xf32>
    %4 = vector.broadcast %3 : vector<1x32xf32> to vector<16x32xf32>
    %5 = arith.addf %2, %4 : vector<16x32xf32>
    %cst_5 = arith.constant dense<0.000000e+00> : vector<16xf32>
    %6 = vector.multi_reduction <add>, %5, %cst_5 [1] : vector<16x32xf32> to vector<16xf32>
    %7 = vector.shape_cast %6 : vector<16xf32> to vector<16x1xf32>
    %cst_6 = arith.constant 3.200000e+01 : f32
    %8 = vector.broadcast %cst_6 : f32 to vector<16x1xf32>
    %9 = arith.divf %7, %8 : vector<16x1xf32>
    %10 = vector.broadcast %9 : vector<16x1xf32> to vector<16x32xf32>
    %11 = arith.subf %5, %10 : vector<16x32xf32>
    %12 = arith.mulf %11, %11 : vector<16x32xf32>
    %cst_7 = arith.constant dense<0.000000e+00> : vector<16xf32>
    %13 = vector.multi_reduction <add>, %12, %cst_7 [1] : vector<16x32xf32> to vector<16xf32>
    %14 = vector.shape_cast %13 : vector<16xf32> to vector<16x1xf32>
    %cst_8 = arith.constant 3.200000e+01 : f32
    %15 = vector.broadcast %cst_8 : f32 to vector<16x1xf32>
    %16 = arith.divf %14, %15 : vector<16x1xf32>
    %cst_9 = arith.constant 9.99999974E-6 : f32
    %17 = vector.broadcast %cst_9 : f32 to vector<16x1xf32>
    %18 = arith.addf %16, %17 : vector<16x1xf32>
    %19 = math.rsqrt %18 : vector<16x1xf32>
    %c0_10 = arith.constant 0 : index
    %c0_11 = arith.constant 0 : index
    %20 = vector.load %arg4[%c0_10, %c0_11] : memref<1x32xf32, #tpu.memory_space<vmem>>, vector<1x32xf32>
    %c0_12 = arith.constant 0 : index
    %c0_13 = arith.constant 0 : index
    %21 = vector.load %arg5[%c0_12, %c0_13] : memref<1x32xf32, #tpu.memory_space<vmem>>, vector<1x32xf32>
    %22 = vector.broadcast %19 : vector<16x1xf32> to vector<16x32xf32>
    %23 = arith.mulf %11, %22 : vector<16x32xf32>
    %24 = vector.broadcast %20 : vector<1x32xf32> to vector<16x32xf32>
    %25 = arith.mulf %23, %24 : vector<16x32xf32>
    %26 = vector.broadcast %21 : vector<1x32xf32> to vector<16x32xf32>
    %27 = arith.addf %25, %26 : vector<16x32xf32>
    %c0_14 = arith.constant 0 : index
    %c0_15 = arith.constant 0 : index
    %28 = vector.load %arg6[%c0_14, %c0_15] : memref<16x32xf32, #tpu.memory_space<vmem>>, vector<16x32xf32>
    tpu.vector_store %arg6[%c0_14, %c0_15], %27 {strides = array<i32>} : memref<16x32xf32, #tpu.memory_space<vmem>>, vector<16x32xf32>,
    return
  }
  func.func @transform_0(%arg0: i32) -> (i32, i32) {
    %c0_i32 = arith.constant 0 : i32
    %c0_i32_0 = arith.constant 0 : i32
    return %arg0, %c0_i32 : i32, i32
  }
  func.func @transform_1(%arg0: i32) -> (i32, i32) {
    %c0_i32 = arith.constant 0 : i32
    %c0_i32_0 = arith.constant 0 : i32
    %c0_i32_1 = arith.constant 0 : i32
    return %c0_i32, %c0_i32_0 : i32, i32
  }
  func.func @transform_2(%arg0: i32) -> (i32, i32) {
    %c0_i32 = arith.constant 0 : i32
    %c0_i32_0 = arith.constant 0 : i32
    %c0_i32_1 = arith.constant 0 : i32
    return %c0_i32, %c0_i32_0 : i32, i32
  }
  func.func @transform_3(%arg0: i32) -> (i32, i32) {
    %c0_i32 = arith.constant 0 : i32
    %c0_i32_0 = arith.constant 0 : i32
    %c0_i32_1 = arith.constant 0 : i32
    return %c0_i32, %c0_i32_0 : i32, i32
  }
  func.func @transform_4(%arg0: i32) -> (i32, i32) {
    %c0_i32 = arith.constant 0 : i32
    %c0_i32_0 = arith.constant 0 : i32
    %c0_i32_1 = arith.constant 0 : i32
    return %c0_i32, %c0_i32_0 : i32, i32
  }
  func.func @transform_5(%arg0: i32) -> (i32, i32) {
    %c0_i32 = arith.constant 0 : i32
    %c0_i32_0 = arith.constant 0 : i32
    return %arg0, %c0_i32 : i32, i32
  }
}

</mosaic_0001>

<bundles_post_ra>
// kernel: tpu_custom_call.1
= control target key start
LH: loop header
LB: loop body
LE: loop exit
PB: predicated region body
PF: predicated region fallthrough
CT: control target
= control target key end

     0   :  { %10 = vsyncpa [#allocation3], 0  ;;  %s439_s0 = inlined_call_operand.hbm [shape: f32[16,32], index: 0, kind: input, shape index: {}]   ;;  %s440_s1 = inlined_call_operand.hbm [shape: f32[32,32], index: 1, kind: input, shape index: {}]   ;;  %s441_s2 = inlined_call_operand.vmem [shape: f32[1,32], index: 2, kind: input, shape index: {}]   ;;  %s442_s3 = inlined_call_operand.vmem [shape: f32[1,32], index: 3, kind: input, shape index: {}]   ;;  %s443_s4 = inlined_call_operand.vmem [shape: f32[1,32], index: 4, kind: input, shape index: {}]   ;;  %s444_s5 = inlined_call_operand.hbm [shape: f32[16,32], index: 5, kind: output, shape index: {}]  }
   0x1   :  { %11 = vsyncpa [#allocation6], 0 }
   0x2   :  { %12 = vsyncpa [#allocation4], 0  ;;  %s340_s18 = smov [#allocation2]   ;;  %s268_s22 = scalar_lea.hbm %s439_s0, 256 }
   0x3   :  { %s18_s19 = sshll.u32 %s340_s18, 4  ;;  %p269_p0 = scmp.ne.s32.totalorder %s439_s0, %s268_s22  ;;  %s19_s19 = int_to_ptr.vmem [resolvable:$true] %s18_s19 }
   0x4   :  { %p272_p1 = scmp.lt.u32.totalorder %s268_s22, %s439_s0 }
   0x6   :  { %p274_p2 = pnand %p272_p1, %p269_p0 }
   0x8   :  { %277 = shalt.err (!%p274_p2)
}
   0x9   :  { %s278_s27 = scalar_lea.vmem %s19_s19, 256  ;;  %p283_p4 = scmp.lt.s32.totalorder %s19_s19, %s19_s19 }
   0xa   :  { %p279_p3 = scmp.ne.s32.totalorder %s19_s19, %s278_s27  ;;  %p284_p5 = scmp.lt.s32.totalorder %s278_s27, %s278_s27 }
   0xc   :  { %p285_p6 = por %p284_p5, %p283_p4 }
   0xe   :  { %p286_p7 = pnand %p285_p6, %p279_p3 }
  0x10   :  { %289 = shalt.err (!%p286_p7)
}
  0x11   :  { %s341_s28 = smov 128   ;;  %s342_s29 = smov 8  }
  0x12   :  { %24 = dma.hbm_to_vmem [thread:$0]  %s439_s0, 256, %s19_s19, [#allocation3], %s341_s28, %s341_s28, %s342_s29  }
  0x13   :  { %s343_s7 = smov [#allocation5]   ;;  %s290_s11 = scalar_lea.hbm %s440_s1, 512 }
  0x14   :  { %s30_s8 = sshll.u32 %s343_s7, 4  ;;  %p291_p8 = scmp.ne.s32.totalorder %s440_s1, %s290_s11  ;;  %s31_s8 = int_to_ptr.vmem [resolvable:$true] %s30_s8 }
  0x15   :  { %p294_p9 = scmp.lt.u32.totalorder %s290_s11, %s440_s1 }
  0x17   :  { %p296_p10 = pnand %p294_p9, %p291_p8 }
  0x19   :  { %299 = shalt.err (!%p296_p10)
}
  0x1a   :  { %s300_s16 = scalar_lea.vmem %s31_s8, 512  ;;  %p305_p12 = scmp.lt.s32.totalorder %s31_s8, %s31_s8 }
  0x1b   :  { %p301_p11 = scmp.ne.s32.totalorder %s31_s8, %s300_s16  ;;  %p306_p13 = scmp.lt.s32.totalorder %s300_s16, %s300_s16 }
  0x1d   :  { %p307_p0 = por %p306_p13, %p305_p12 }
  0x1f   :  { %p308_p1 = pnand %p307_p0, %p301_p11 }
  0x21   :  { %311 = shalt.err (!%p308_p1)
}
  0x22   :  { %36 = dma.hbm_to_vmem [thread:$0]  %s440_s1, 512, %s31_s8, [#allocation6], %s341_s28, %s341_s28, %s342_s29  }
  0x23   :  { %334 = dma.done.wait [#allocation3], 256  }
  0x24   :  { %335 = vsyncadd [#allocation3], 4294967040 }
  0x25   :  { %336 = dma.done.wait [#allocation6], 512  }
  0x26   :  { %337 = vsyncadd [#allocation6], 4294966784  ;;  %vm62_vm0 = vcmask 261120   ;;  %v51_v0 = vld [vmem:[#allocation5] sm:$0xff]  ;;  %v52_v1 = vld [vmem:[#allocation5 + $0x8] sm:$0xff]  ;;  %s344_s22 = smov [#allocation7]  }
  0x27   :  { %vm248_vm1 = vmpackc.low %vm62_vm0, %vm62_vm0  ;;  %v53_v2 = vld [vmem:[#allocation5 + $0x10] sm:$0xff]  ;;  %v247_v3 = vpack.c.bf16 %v52_v1, %v51_v0  ;;  %v54_v4 = vld [vmem:[#allocation5 + $0x18] sm:$0xff]  ;;  %s208_s23 = sshll.u32 %s344_s22, 4  ;;  %s209_s23 = int_to_ptr.vmem [resolvable:$true] %s208_s23 }
  0x28   :  { %v49_v5 = vld [vmem:[#allocation2] sm:$0xff]  ;;  %v253_v6 = vpack.c.bf16 %v54_v4, %v53_v2  ;;  %v50_v7 = vld [vmem:[#allocation2 + $0x8] sm:$0xff]  ;;  %s312_s24 = scalar_lea.vmem %s209_s23, 256  ;;  %p317_p3 = scmp.lt.s32.totalorder %s209_s23, %s209_s23 }
  0x29   :  { %244 = vmatprep.mubr.msk.f32.mxu0 %vm62_vm0, %v49_v5  ;;  %249 = vmatprep.subr.msk.bf16.mxu0 %vm248_vm1, %v247_v3  ;;  %v221_v8 = vld [vmem:[%s441_s2] ss:$0 sm:$0xff]  ;;  %p313_p2 = scmp.ne.s32.totalorder %s209_s23, %s312_s24  ;;  %p318_p4 = scmp.lt.s32.totalorder %s312_s24, %s312_s24 }
  0x2a   :  { %252 = vmatpush3.bf16.xpose.msk.msra.mxu0 %vm248_vm1, %v247_v3  ;;  %v228_v32 = vld [vmem:[%s442_s3] ss:$0 sm:$0xff] }
  0x2b   :  { %255 = vmatprep.subr.msk.bf16.mxu0 %vm248_vm1, %v253_v6  ;;  %v229_v34 = vld [vmem:[%s443_s4] ss:$0 sm:$0xff]  ;;  %p319_p5 = por %p318_p4, %p317_p3 }
  0x2d   :  { %p320_p6 = pnand %p319_p5, %p313_p2 }
  0x32   :  { %258 = vmatpush3.bf16.xpose.msk.msra.mxu0 %vm248_vm1, %v253_v6 }
  0x39   :  { %245 = vmatmul.mubr.msk.f32.vlgmr.msra.gmra.mrb[0].mxu0 %vm62_vm0, %v50_v7 }
 0x10c   :  { %v246_v9 = vpop.f32.mrb[0].mxu0 }
 0x10d   :  { %v147_v10 = vpop.f32.mrb[1].mxu0  ;;  %v153_v12 = vadd.f32 %v246_v9, %v221_v8 }
 0x10e   :  { %v148_v11 = vadd.f32 %v221_v8, %v147_v10 }
 0x10f   :  { %v159_v14 = vsel %vm62_vm0, %v153_v12, 0.0 }
 0x110   :  { %v156_v13 = vsel %vm62_vm0, %v148_v11, 0.0 }
 0x111   :  { %157 = vadd.xlane.f32.xlu0 %v156_v13 }
 0x115   :  { %160 = vadd.xlane.f32.xlu0 %v159_v14 }
 0x19e   :  { %v158_v15 = vpop.xlane.xlu0 %157 }
 0x19f   :  { %v163_v16 = vmul.f32 0.03125, %v158_v15 }
 0x1a1   :  { %v165_v17 = vsub.f32 %v148_v11, %v163_v16 }
 0x1a2   :  { %v161_v18 = vpop.xlane.xlu0 %160 }
 0x1a3   :  { %v164_v19 = vmul.f32 0.03125, %v161_v18  ;;  %v167_v20 = vmul.f32 %v165_v17, %v165_v17 }
 0x1a5   :  { %v166_v21 = vsub.f32 %v153_v12, %v164_v19  ;;  %v169_v22 = vsel %vm62_vm0, %v167_v20, 0.0 }
 0x1a6   :  { %170 = vadd.xlane.f32.xlu1 %v169_v22 }
 0x1a7   :  { %v168_v23 = vmul.f32 %v166_v21, %v166_v21 }
 0x1a9   :  { %v172_v24 = vsel %vm62_vm0, %v168_v23, 0.0 }
 0x1aa   :  { %173 = vadd.xlane.f32.xlu1 %v172_v24 }
 0x233   :  { %v171_v25 = vpop.xlane.xlu1 %170 }
 0x234   :  { %v175_v26 = vmul.f32 0.03125, %v171_v25 }
 0x236   :  { %v177_v27 = vadd.f32 1e-05, %v175_v26 }
 0x237   :  { %v174_v28 = vpop.xlane.xlu1 %173 }
 0x238   :  { %264 = vrsqrt.f32 %v177_v27  ;;  %v176_v29 = vmul.f32 0.03125, %v174_v28 }
 0x23a   :  { %v178_v30 = vadd.f32 1e-05, %v176_v29 }
 0x23c   :  { %266 = vrsqrt.f32 %v178_v30 }
 0x242   :  { %v265_v31 = vpop.eup %264 }
 0x243   :  { %v183_v33 = vmul.f32 %v265_v31, %v165_v17 }
 0x245   :  { %v191_v35 = vmul.f32 %v228_v32, %v183_v33 }
 0x246   :  { %v267_v36 = vpop.eup %266 }
 0x247   :  { %v184_v37 = vmul.f32 %v267_v36, %v166_v21  ;;  %v199_v38 = vadd.f32 %v229_v34, %v191_v35 }
 0x249   :  { %v192_v39 = vmul.f32 %v228_v32, %v184_v37  ;;  %201 = vst.msk [vmem:[#allocation7] sm:$0xff] %vm62_vm0, %v199_v38 }
 0x24b   :  { %v200_v40 = vadd.f32 %v229_v34, %v192_v39 }
 0x24d   :  { %202 = vst.msk [vmem:[#allocation7 + $0x8] sm:$0xff] %vm62_vm0, %v200_v40 }
 0x24e   :  { %323 = shalt.err (!%p320_p6)
}
 0x24f   :  { %s324_s25 = scalar_lea.hbm %s444_s5, 256 }
 0x250   :  { %p325_p7 = scmp.ne.s32.totalorder %s444_s5, %s324_s25  ;;  %p328_p8 = scmp.lt.u32.totalorder %s324_s25, %s444_s5 }
 0x252   :  { %p330_p9 = pnand %p328_p8, %p325_p7 }
 0x254   :  { %333 = shalt.err (!%p330_p9)
}
 0x255   :  { %214 = dma.vmem_to_hbm [thread:$0]  %s209_s23, 256, %s444_s5, [#allocation4], %s341_s28, %s341_s28, %s342_s29  }
 0x256   :  { %338 = dma.done.wait [#allocation4], 256  }
 0x257   :  { %339 = vsyncadd [#allocation4], 4294967040 }
 0x258   :  { %218 = vsyncpa [#allocation3], 1 }
 0x259   :  { %219 = vsyncpa [#allocation6], 1 }
 0x25a   :  { %220 = vsyncpa [#allocation4], 1 }

</bundles_post_ra>
